<compile_context>
chip_gen: v7x
topology: tpu7x:2x2x1
jax: 0.10.0
libtpu: 0.0.40
codegen_flags: <defaults>
</compile_context>

<pallas_src>
import functools

import jax
import jax.numpy as jnp
from jax.experimental import pallas as pl
from jax.experimental.pallas import tpu as pltpu


def _round_up(x, m):
    return (x + m - 1) // m * m


def _vmem_plan():
    """Per-generation VMEM plan: (vmem_limit_bytes, activation_budget, min_grid_steps)."""
    kind = ""
    try:
        kind = jax.devices()[0].device_kind.lower()
    except Exception:
        pass
    if "v2" in kind or "v3" in kind:          # small-VMEM legacy chips
        return 16 * 2**20, 12 * 2**20, 1
    if "7" in kind:                           # v7x: 64 MiB VMEM per TC, 2 TCs
        return 48 * 2**20, 40 * 2**20, 2
    if any(t in kind for t in ("v4", "v5", "v6")):   # 128 MiB VMEM
        return 96 * 2**20, 80 * 2**20, 1
    return 48 * 2**20, 40 * 2**20, 1          # unknown: conservative


def _pick_tiling(B, feat, H1, H2, in_size, tile_b_req, act_budget, min_steps):
    """Choose (tile_b, n_tiles, B_pad) under a VMEM budget with bounded padding."""
    # Sublane packing of the streamed input block (f32 -> 8 rows, bf16 -> 16).
    sub_pack = max(1, 4 // in_size) * 8
    feat_pad = _round_up(feat, sub_pack)
    per_elem = (2 * feat_pad * in_size          # x block, double-buffered
                + 2 * 8 * 4                     # (1, tile) f32 out padded to 8 sublanes, x2
                + H1 * (4 + in_size)            # h1: f32 dot result + compute-dtype copy
                + H2 * (4 + in_size))           # h2: same
    weight_bytes = (H1 * feat + H2 * H1 + H2) * in_size + (H1 + H2 + 1) * 4
    cap = max(0, act_budget - 2 * weight_bytes) // per_elem
    cap = max(128, cap // 128 * 128)

    B128 = _round_up(max(B, 1), 128)
    tile_b = cap if tile_b_req is None else tile_b_req
    tile_b = max(128, min(_round_up(tile_b, 128), cap))

    n_tiles = pl.cdiv(B128, tile_b)
    if B128 >= min_steps * 128:                 # let both v7x TCs get work
        n_tiles = max(n_tiles, min_steps)
    tile_b = _round_up(pl.cdiv(B128, n_tiles), 128)   # balanced tiles, small padding
    return tile_b, n_tiles, tile_b * n_tiles


def _mlp_critic_kernel(x_ref, w1_ref, b1_ref, w2_ref, b2_ref, w3_ref, b3_ref,
                       out_ref):
    cdt = w2_ref.dtype
    # Layer 1: (H1, feat) @ (feat, TB) + (H1, 1)   (one MXU push; no concat)
    h1 = jnp.dot(w1_ref[...], x_ref[...], preferred_element_type=jnp.float32)
    h1 = jnp.maximum(h1 + b1_ref[...], 0.0).astype(cdt)
    # Layer 2: (H2, H1) @ (H1, TB) + (H2, 1)
    h2 = jnp.dot(w2_ref[...], h1, preferred_element_type=jnp.float32)
    h2 = jnp.maximum(h2 + b2_ref[...], 0.0).astype(cdt)
    # Output layer: (1, H2) @ (H2, TB) + (1, 1) -> lane-dense (1, TB) store.
    out_ref[...] = (jnp.dot(w3_ref[...], h2, preferred_element_type=jnp.float32)
                    + b3_ref[...])


@functools.partial(jax.jit, static_argnames=("tile_b", "compute_dtype"))
def mlp_critic_forward(obs, act, params, *, tile_b=None,
                       compute_dtype=jnp.bfloat16):
    """MLPCritic forward in one Pallas kernel.

    obs: (B, obs_dim) f32, act: (B, act_dim) f32.
    params: [(w1, b1), (w2, b2), (w3, b3)] in PyTorch layout (w: (out, in), b: (out,)).
    Returns q-values of shape (B,) (trailing dim squeezed, as in PyTorch).
    Accumulation and bias/ReLU math are always f32; `compute_dtype` only sets
    the dtype streamed into the MXU (bf16 default halves the HBM traffic).
    """
    (w1, b1), (w2, b2), (w3, b3) = params
    B, obs_dim = obs.shape
    act_dim = act.shape[1]
    feat = obs_dim + act_dim
    H1, H2 = w1.shape[0], w2.shape[0]

    vmem_limit, act_budget, min_steps = _vmem_plan()
    in_size = jnp.dtype(compute_dtype).itemsize
    tile_b, n_tiles, B_pad = _pick_tiling(B, feat, H1, H2, in_size,
                                          tile_b, act_budget, min_steps)

    # Single input slab (feat, B_pad): cast + concat + transpose + pad in one
    # fused XLA copy (this replaces torch.cat and two separate streams).
    x_t = jnp.concatenate([obs, act], axis=-1).astype(compute_dtype).T
    if B_pad > B:
        x_t = jnp.pad(x_t, ((0, 0), (0, B_pad - B)))

    # Resident (VMEM-pinned) weights/biases; biases stay f32 as (out, 1).
    w1c = w1.astype(compute_dtype)
    w2c = w2.astype(compute_dtype)
    w3c = w3.astype(compute_dtype)
    b1c = b1.astype(jnp.float32).reshape(H1, 1)
    b2c = b2.astype(jnp.float32).reshape(H2, 1)
    b3c = b3.astype(jnp.float32).reshape(1, 1)

    batch_map = lambda i: (0, i)     # only the batch (lane) axis moves
    resident = lambda i: (0, 0)      # weights stay put in VMEM across steps

    out = pl.pallas_call(
        _mlp_critic_kernel,
        out_shape=jax.ShapeDtypeStruct((1, B_pad), jnp.float32),
        grid=(n_tiles,),
        in_specs=[
            pl.BlockSpec((feat, tile_b), batch_map),
            pl.BlockSpec((H1, feat), resident),
            pl.BlockSpec((H1, 1), resident),
            pl.BlockSpec((H2, H1), resident),
            pl.BlockSpec((H2, 1), resident),
            pl.BlockSpec((1, H2), resident),
            pl.BlockSpec((1, 1), resident),
        ],
        out_specs=pl.BlockSpec((1, tile_b), batch_map),
        compiler_params=pltpu.CompilerParams(
            dimension_semantics=("parallel",),   # v7x: split batch across 2 TCs
            vmem_limit_bytes=vmem_limit,
        ),
    )(x_t, w1c, b1c, w2c, b2c, w3c, b3c)

    return out[0, :B]


def init_params(key, obs_dim, act_dim, hidden_sizes):
    """nn.Linear-style init: uniform(-1/sqrt(fan_in), 1/sqrt(fan_in)),
    weights in PyTorch (out, in) layout, biases (out,)."""
    layer_sizes = [obs_dim + act_dim] + list(hidden_sizes) + [1]
    params = []
    for i in range(len(layer_sizes) - 1):
        fan_in, fan_out = layer_sizes[i], layer_sizes[i + 1]
        key, kw, kb = jax.random.split(key, 3)
        bound = 1.0 / jnp.sqrt(jnp.float32(fan_in))
        w = jax.random.uniform(kw, (fan_out, fan_in), jnp.float32, -bound, bound)
        b = jax.random.uniform(kb, (fan_out,), jnp.float32, -bound, bound)
        params.append((w, b))
    return params


def mlp_critic_ref(obs, act, params):
    """Plain-JAX reference (matches the PyTorch MLPCritic forward)."""
    x = jnp.concatenate([obs, act], axis=-1)
    (w1, b1), (w2, b2), (w3, b3) = params
    x = jnp.maximum(x @ w1.T + b1, 0.0)
    x = jnp.maximum(x @ w2.T + b2, 0.0)
    x = x @ w3.T + b3
    return jnp.squeeze(x, axis=-1)


if __name__ == "__main__":
    obs_dim, act_dim = 16, 4
    hidden_sizes = [32, 32]
    batch = 8

    key = jax.random.PRNGKey(0)
    key, k_obs, k_act = jax.random.split(key, 3)
    obs = jax.random.normal(k_obs, (batch, obs_dim), jnp.float32)
    act = jax.random.normal(k_act, (batch, act_dim), jnp.float32)

    params = init_params(key, obs_dim, act_dim, hidden_sizes)
    q_ref = mlp_critic_ref(obs, act, params)

    # f32 MXU path (portable, tight tolerance).
    q_f32 = jax.block_until_ready(
        mlp_critic_forward(obs, act, params, compute_dtype=jnp.float32))
    assert q_f32.shape == (batch,), q_f32.shape
    assert jnp.allclose(q_f32, q_ref, atol=1e-5, rtol=1e-5), (q_f32, q_ref)

    # Default path: bf16 MXU inputs, f32 accumulation (looser tolerance).
    q_bf16 = jax.block_until_ready(mlp_critic_forward(obs, act, params))
    assert q_bf16.shape == (batch,), q_bf16.shape
    assert jnp.allclose(q_bf16, q_ref, atol=5e-2, rtol=5e-2), (q_bf16, q_ref)

    print("KERNEL_OK")
</pallas_src>

<mosaic_0001>
module attributes {stable_mosaic.version = 11 : i64} {
  func.func @_mlp_critic_kernel(%arg0: i32, %arg1: memref<20x128xf32, #tpu.memory_space<vmem>>, %arg2: memref<32x20xf32, #tpu.memory_space<vmem>>, %arg3: memref<32x1xf32, #tpu.memory_space<vmem>>, %arg4: memref<32x32xf32, #tpu.memory_space<vmem>>, %arg5: memref<32x1xf32, #tpu.memory_space<vmem>>, %arg6: memref<1x32xf32, #tpu.memory_space<vmem>>, %arg7: memref<1x1xf32, #tpu.memory_space<vmem>>, %arg8: memref<1x128xf32, #tpu.memory_space<vmem>>) attributes {dimension_semantics = [#tpu.dimension_semantics<parallel>], iteration_bounds = array<i64: 1>, scalar_prefetch = 0 : i64, scratch_operands = 0 : i64, tpu.core_type = #tpu.core_type<tc>, window_params = [{transform_indices = @transform_0, window_bounds = array<i64: 20, 128>}, {pipeline_mode = #tpu.pipeline_mode<synchronous>, transform_indices = @transform_1, window_bounds = array<i64: 32, 20>}, {pipeline_mode = #tpu.pipeline_mode<synchronous>, transform_indices = @transform_2, window_bounds = array<i64: 32, 1>}, {pipeline_mode = #tpu.pipeline_mode<synchronous>, transform_indices = @transform_3, window_bounds = array<i64: 32, 32>}, {pipeline_mode = #tpu.pipeline_mode<synchronous>, transform_indices = @transform_4, window_bounds = array<i64: 32, 1>}, {pipeline_mode = #tpu.pipeline_mode<synchronous>, transform_indices = @transform_5, window_bounds = array<i64: 1, 32>}, {pipeline_mode = #tpu.pipeline_mode<synchronous>, transform_indices = @transform_6, window_bounds = array<i64: 1, 1>}, {transform_indices = @transform_7, window_bounds = array<i64: 1, 128>}]} {
    %c0 = arith.constant 0 : index
    %c0_0 = arith.constant 0 : index
    %0 = vector.load %arg2[%c0, %c0_0] : memref<32x20xf32, #tpu.memory_space<vmem>>, vector<32x20xf32>
    %c0_1 = arith.constant 0 : index
    %c0_2 = arith.constant 0 : index
    %1 = vector.load %arg1[%c0_1, %c0_2] : memref<20x128xf32, #tpu.memory_space<vmem>>, vector<20x128xf32>
    %cst = arith.constant dense<0.000000e+00> : vector<32x128xf32>
    %2 = tpu.matmul %0, %1, %cst {dimension_numbers = #tpu.dot_dimension_numbers<[1], [0], [0], [1], [0, 0, 1, 1], [], []>} : vector<32x20xf32>, vector<20x128xf32>, vector<32x128xf32> -> vector<32x128xf32>
    %c0_3 = arith.constant 0 : index
    %c0_4 = arith.constant 0 : index
    %3 = vector.load %arg3[%c0_3, %c0_4] : memref<32x1xf32, #tpu.memory_space<vmem>>, vector<32x1xf32>
    %4 = vector.broadcast %3 : vector<32x1xf32> to vector<32x128xf32>
    %5 = arith.addf %2, %4 : vector<32x128xf32>
    %cst_5 = arith.constant 0.000000e+00 : f32
    %6 = vector.broadcast %cst_5 : f32 to vector<32x128xf32>
    %7 = arith.maximumf %5, %6 : vector<32x128xf32>
    %c0_6 = arith.constant 0 : index
    %c0_7 = arith.constant 0 : index
    %8 = vector.load %arg4[%c0_6, %c0_7] : memref<32x32xf32, #tpu.memory_space<vmem>>, vector<32x32xf32>
    %cst_8 = arith.constant dense<0.000000e+00> : vector<32x128xf32>
    %9 = tpu.matmul %8, %7, %cst_8 {dimension_numbers = #tpu.dot_dimension_numbers<[1], [0], [0], [1], [0, 0, 1, 1], [], []>} : vector<32x32xf32>, vector<32x128xf32>, vector<32x128xf32> -> vector<32x128xf32>
    %c0_9 = arith.constant 0 : index
    %c0_10 = arith.constant 0 : index
    %10 = vector.load %arg5[%c0_9, %c0_10] : memref<32x1xf32, #tpu.memory_space<vmem>>, vector<32x1xf32>
    %11 = vector.broadcast %10 : vector<32x1xf32> to vector<32x128xf32>
    %12 = arith.addf %9, %11 : vector<32x128xf32>
    %cst_11 = arith.constant 0.000000e+00 : f32
    %13 = vector.broadcast %cst_11 : f32 to vector<32x128xf32>
    %14 = arith.maximumf %12, %13 : vector<32x128xf32>
    %c0_12 = arith.constant 0 : index
    %c0_13 = arith.constant 0 : index
    %15 = vector.load %arg6[%c0_12, %c0_13] : memref<1x32xf32, #tpu.memory_space<vmem>>, vector<1x32xf32>
    %cst_14 = arith.constant dense<0.000000e+00> : vector<1x128xf32>
    %16 = tpu.matmul %15, %14, %cst_14 {dimension_numbers = #tpu.dot_dimension_numbers<[1], [0], [0], [1], [0, 0, 1, 1], [], []>} : vector<1x32xf32>, vector<32x128xf32>, vector<1x128xf32> -> vector<1x128xf32>
    %c0_15 = arith.constant 0 : index
    %c0_16 = arith.constant 0 : index
    %17 = vector.load %arg7[%c0_15, %c0_16] : memref<1x1xf32, #tpu.memory_space<vmem>>, vector<1x1xf32>
    %18 = vector.broadcast %17 : vector<1x1xf32> to vector<1x128xf32>
    %19 = arith.addf %16, %18 : vector<1x128xf32>
    %c0_17 = arith.constant 0 : index
    %c0_18 = arith.constant 0 : index
    %20 = vector.load %arg8[%c0_17, %c0_18] : memref<1x128xf32, #tpu.memory_space<vmem>>, vector<1x128xf32>
    tpu.vector_store %arg8[%c0_17, %c0_18], %19 {strides = array<i32>} : memref<1x128xf32, #tpu.memory_space<vmem>>, vector<1x128xf32>,
    return
  }
  func.func @transform_0(%arg0: i32) -> (i32, i32) {
    %c0_i32 = arith.constant 0 : i32
    %c0_i32_0 = arith.constant 0 : i32
    return %c0_i32, %arg0 : i32, i32
  }
  func.func @transform_1(%arg0: i32) -> (i32, i32) {
    %c0_i32 = arith.constant 0 : i32
    %c0_i32_0 = arith.constant 0 : i32
    %c0_i32_1 = arith.constant 0 : i32
    return %c0_i32, %c0_i32_0 : i32, i32
  }
  func.func @transform_2(%arg0: i32) -> (i32, i32) {
    %c0_i32 = arith.constant 0 : i32
    %c0_i32_0 = arith.constant 0 : i32
    %c0_i32_1 = arith.constant 0 : i32
    return %c0_i32, %c0_i32_0 : i32, i32
  }
  func.func @transform_3(%arg0: i32) -> (i32, i32) {
    %c0_i32 = arith.constant 0 : i32
    %c0_i32_0 = arith.constant 0 : i32
    %c0_i32_1 = arith.constant 0 : i32
    return %c0_i32, %c0_i32_0 : i32, i32
  }
  func.func @transform_4(%arg0: i32) -> (i32, i32) {
    %c0_i32 = arith.constant 0 : i32
    %c0_i32_0 = arith.constant 0 : i32
    %c0_i32_1 = arith.constant 0 : i32
    return %c0_i32, %c0_i32_0 : i32, i32
  }
  func.func @transform_5(%arg0: i32) -> (i32, i32) {
    %c0_i32 = arith.constant 0 : i32
    %c0_i32_0 = arith.constant 0 : i32
    %c0_i32_1 = arith.constant 0 : i32
    return %c0_i32, %c0_i32_0 : i32, i32
  }
  func.func @transform_6(%arg0: i32) -> (i32, i32) {
    %c0_i32 = arith.constant 0 : i32
    %c0_i32_0 = arith.constant 0 : i32
    %c0_i32_1 = arith.constant 0 : i32
    return %c0_i32, %c0_i32_0 : i32, i32
  }
  func.func @transform_7(%arg0: i32) -> (i32, i32) {
    %c0_i32 = arith.constant 0 : i32
    %c0_i32_0 = arith.constant 0 : i32
    return %c0_i32, %arg0 : i32, i32
  }
}

</mosaic_0001>

<bundles_post_ra>
// kernel: mlp_critic_forward.1
= control target key start
LH: loop header
LB: loop body
LE: loop exit
PB: predicated region body
PF: predicated region fallthrough
CT: control target
= control target key end

     0   :  { %vm59_vm0 = vcmask 162816   ;;  %v475_v2 = vmov 0   ;;  %vm72_vm1 = vcmask 1043456   ;;  %vm193_vm2 = vcmask 261120   ;;  %s594_s0 = inlined_call_operand.vmem [shape: f32[20,128], index: 0, kind: input, shape index: {}]   ;;  %s595_s1 = inlined_call_operand.vmem [shape: f32[32,20], index: 1, kind: input, shape index: {}]   ;;  %s596_s2 = inlined_call_operand.vmem [shape: f32[32,1], index: 2, kind: input, shape index: {}]   ;;  %s597_s6 = inlined_call_operand.<no memory space> [shape: f32[1,1], index: 6, kind: input, shape index: {}]   ;;  %s598_s4 = inlined_call_operand.vmem [shape: f32[32,1], index: 4, kind: input, shape index: {}]   ;;  %s599_s3 = inlined_call_operand.vmem [shape: f32[32,32], index: 3, kind: input, shape index: {}]   ;;  %s600_s5 = inlined_call_operand.vmem [shape: f32[1,32], index: 5, kind: input, shape index: {}]   ;;  %s601_s7 = inlined_call_operand.vmem [shape: f32[1,128], index: 7, kind: output, shape index: {}]  }
   0x1   :  { %v32_v0 = vld [vmem:[%s594_s0] sm:$0xff]  ;;  %v33_v1 = vld [vmem:[%s594_s0 + $0x8] sm:$0xff]  ;;  %473 = vset.pattern.permute.xlu0 %v475_v2  ;;  %474 = vset.pattern.permute.xlu1 %v475_v2  ;;  %v12_v3 = vstv %s597_s6  ;;  %v34_v6 = vld [vmem:[%s594_s0 + $0x10] sm:$0xf]  ;;  %v476_v41 = vmov 0.0|0.0   ;;  %vm477_vm3 = vmmov 0   ;;  %v302_v62 = vlaneseq }
   0x2   :  { %v451_v4 = vpack.c.bf16 %v33_v1, %v32_v0  ;;  %v28_v5 = vld [vmem:[%s595_s1] sm:$0xff]  ;;  %13 = vst [vmem:[#allocation2] sm:$0x1] %v12_v3  ;;  %v37_v8 = vld [vmem:[%s596_s2 + $0x10] sm:$0xff]  ;;  %v36_v9 = vld [vmem:[%s596_s2 + $0x8] sm:$0xff]  ;;  %v478_v42 = vmov 0.0  }
   0x3   :  { %420 = vmatprep.mubr.msk.f32.mxu0 %vm59_vm0, %v28_v5  ;;  %v35_v7 = vld [vmem:[%s596_s2] sm:$0xff]  ;;  %51 = vperm.xlu1 %474, %v37_v8   ;;  %v38_v10 = vld [vmem:[%s596_s2 + $0x18] sm:$0xff]  ;;  %v29_v11 = vld [vmem:[%s595_s1 + $0x8] sm:$0xff]  ;;  %v303_v63 = vshrl.u32 %v302_v62, 7 }
   0x4   :  { %452 = vmatprep.subr.bf16.mxu0 %v451_v4  ;;  %41 = vperm.xlu0 %473, %v35_v7   ;;  %v30_v12 = vld [vmem:[%s595_s1 + $0x10] sm:$0xff]  ;;  %v169_v13 = vld [vmem:[%s598_s4] sm:$0xff]  ;;  %v170_v14 = vld [vmem:[%s598_s4 + $0x8] sm:$0xff] }
   0x5   :  { %454 = vmatpush3.bf16.msra.mxu0 %v451_v4  ;;  %v31_v15 = vld [vmem:[%s595_s1 + $0x18] sm:$0xff]  ;;  %v171_v16 = vld [vmem:[%s598_s4 + $0x10] sm:$0xff]  ;;  %v165_v19 = vld [vmem:[%s599_s3] sm:$0xff]  ;;  %v304_v0 = vsub.s32 0, %v303_v63 }
   0x6   :  { %418 = vmatprep.subr.msk.mxu0 %vm72_vm1, %v34_v6  ;;  %v172_v17 = vld [vmem:[%s598_s4 + $0x18] sm:$0xff]  ;;  %434 = vmatprep.mubr.msk.f32.mxu1 %vm193_vm2, %v165_v19  ;;  %v166_v38 = vld [vmem:[%s599_s3 + $0x8] sm:$0xff]  ;;  %v167_v39 = vld [vmem:[%s599_s3 + $0x10] sm:$0xff] }
   0x7   :  { %56 = vperm.xlu1 %474, %v38_v10   ;;  %v168_v40 = vld [vmem:[%s599_s3 + $0x18] sm:$0xff]  ;;  %v295_v61 = vld [vmem:[%s600_s5] sm:$0x1] }
   0x8   :  { %46 = vperm.xlu0 %473, %v36_v9  }
   0x9   :  { %419 = vmatpush3.msk.msra.mxu0 %vm72_vm1, %v34_v6  ;;  %v296_v18 = vld [vmem:[#allocation2] sm:$0x1] }
   0xa   :  { %421 = vmatmul.mubr.msk.f32.vlgmr.msra.gmra.mrb[0].mxu0 %vm59_vm0, %v29_v11  ;;  %463 = vmatprep.subr.bf16.mxu0 %v476_v41 }
   0xb   :  { %423 = vmatprep.mubr.msk.f32.mxu0 %vm59_vm0, %v30_v12  ;;  %180 = vperm.xlu1 %474, %v170_v14  }
   0xc   :  { %175 = vperm.xlu0 %473, %v169_v13  }
   0xe   :  { %424 = vmatmul.mubr.msk.f32.gmra.mrb[2].mxu0 %vm59_vm0, %v31_v15 }
   0xf   :  { %190 = vperm.xlu1 %474, %v172_v17   ;;  %448 = vmatprep.mubr.msk.f32.mxu0 %vm477_vm3, %v478_v42 }
  0x10   :  { %185 = vperm.xlu0 %473, %v171_v16  }
  0x14   :  { %299 = vperm.xlu0 %473, %v296_v18  }
  0x82   :  { %v52_v21 = vpop.permute.xlu1 %51 }
  0x83   :  { %v42_v20 = vpop.permute.xlu0 %41 }
  0x86   :  { %v57_v28 = vpop.permute.xlu1 %56 }
  0x87   :  { %v47_v22 = vpop.permute.xlu0 %46 }
  0x8a   :  { %v181_v43 = vpop.permute.xlu1 %180 }
  0x8b   :  { %v176_v44 = vpop.permute.xlu0 %175 }
  0x8e   :  { %v191_v50 = vpop.permute.xlu1 %190 }
  0x8f   :  { %v186_v53 = vpop.permute.xlu0 %185 }
  0x93   :  { %v300_v1 = vpop.permute.xlu0 %299 }
  0x94   :  { %v305_v2 = vrot.slane %v300_v1, %v304_v0 }
  0xdd   :  { %v422_v23 = vpop.f32.mrb[0].mxu0 }
  0xde   :  { %v148_v24 = vadd.f32 %v422_v23, %v47_v22  ;;  %v142_v25 = vpop.f32.mrb[1].mxu0 }
  0xdf   :  { %v143_v26 = vadd.f32 %v142_v25, %v42_v20 }
  0xe0   :  { %v162_v27 = vmax.f32 %v148_v24, 0.0 }
  0xe1   :  { %v161_v29 = vmax.f32 %v143_v26, 0.0  ;;  %v425_v30 = vpop.f32.mrb[2].mxu0 }
  0xe2   :  { %v158_v31 = vadd.f32 %v425_v30, %v57_v28  ;;  %v152_v32 = vpop.f32.mrb[3].mxu0 }
  0xe3   :  { %v153_v33 = vadd.f32 %v152_v32, %v52_v21  ;;  %v455_v34 = vpack.c.bf16 %v162_v27, %v161_v29 }
  0xe4   :  { %v164_v35 = vmax.f32 %v158_v31, 0.0 }
  0xe5   :  { %v163_v36 = vmax.f32 %v153_v33, 0.0  ;;  %456 = vmatprep.subr.bf16.mxu1 %v455_v34 }
  0xe6   :  { %458 = vmatpush3.bf16.msra.mxu1 %v455_v34 }
  0xe7   :  { %v459_v37 = vpack.c.bf16 %v164_v35, %v163_v36 }
  0xe9   :  { %460 = vmatprep.subr.bf16.mxu1 %v459_v37 }
  0xea   :  { %462 = vmatpush3.bf16.msra.mxu1 %v459_v37 }
  0xed   :  { %435 = vmatmul.mubr.msk.f32.vlgmr.msra.gmra.mrb[0].mxu1 %vm193_vm2, %v166_v38 }
  0xee   :  { %437 = vmatprep.mubr.msk.f32.mxu1 %vm193_vm2, %v167_v39 }
  0xf1   :  { %438 = vmatmul.mubr.msk.f32.gmra.mrb[2].mxu1 %vm193_vm2, %v168_v40 }
 0x1c0   :  { %v436_v45 = vpop.f32.mrb[0].mxu1 }
 0x1c1   :  { %v278_v46 = vadd.f32 %v436_v45, %v181_v43  ;;  %v272_v47 = vpop.f32.mrb[1].mxu1 }
 0x1c2   :  { %v273_v48 = vadd.f32 %v272_v47, %v176_v44 }
 0x1c3   :  { %v292_v49 = vmax.f32 %v278_v46, 0.0 }
 0x1c4   :  { %v291_v51 = vmax.f32 %v273_v48, 0.0  ;;  %v439_v52 = vpop.f32.mrb[2].mxu1 }
 0x1c5   :  { %v288_v54 = vadd.f32 %v439_v52, %v191_v50  ;;  %v282_v55 = vpop.f32.mrb[3].mxu1 }
 0x1c6   :  { %v464_v56 = vpack.c.bf16 %v292_v49, %v291_v51  ;;  %v283_v57 = vadd.f32 %v282_v55, %v186_v53 }
 0x1c7   :  { %v294_v58 = vmax.f32 %v288_v54, 0.0 }
 0x1c8   :  { %v293_v59 = vmax.f32 %v283_v57, 0.0  ;;  %465 = vmatpush3.bf16.msra.mxu0 %v464_v56 }
 0x1c9   :  { %466 = vmatprep.subr.bf16.mxu0 %v476_v41 }
 0x1ca   :  { %v467_v60 = vpack.c.bf16 %v294_v58, %v293_v59 }
 0x1cc   :  { %468 = vmatpush3.bf16.msra.mxu0 %v467_v60 }
 0x1cf   :  { %449 = vmatmul.mubr.msk.f32.vlgmr.msra.gmra.mrb[4].mxu0 %vm193_vm2, %v295_v61 }
 0x2a2   :  { %v375_v3 = vpop.f32.mrb[4].mxu0 }
 0x2a3   :  { %v376_v4 = vadd.f32 %v375_v3, %v305_v2  ;;  %v450_v5 = vpop.f32.mrb[5].mxu0 }
 0x2a5   :  { %379 = vst [vmem:[%s601_s7] sm:$0x1] %v376_v4 }

</bundles_post_ra>
